<compile_context>
chip_gen: v6e
topology: v6e:2x2x1
jax: 0.10.0
libtpu: 0.0.40
codegen_flags: <defaults>
</compile_context>

<pallas_src>
import jax
import jax.numpy as jnp
from jax.experimental import pallas as pl
from jax.experimental.pallas import tpu as pltpu

_LANE = 128
_MAX_TILE_COLS = 2048                      # lane-tile cap: bounds block bytes for wide views
_SUBLANE_MULTIPLE = {4: 8, 2: 16, 1: 32}   # itemsize -> min sublane multiple for dense vregs


def _round_up(n: int, m: int) -> int:
    return ((n + m - 1) // m) * m


def _vmem_capacity_bytes() -> int:
    """Physical VMEM of this generation; conservative v7x-per-TC fallback if unknown."""
    try:
        info = pltpu.get_tpu_info()
        cap = getattr(info, "vmem_capacity_bytes", None)
        if cap:
            return int(cap)
    except Exception:
        pass
    return 64 * 2**20


def _sigmoid_kernel(x_ref, o_ref):
    # f32 intermediates (exact tails for bf16/f16 inputs); exp goes to the EUP and the
    # exact divide to the VPU -- both have huge slack in this memory-bound kernel.
    xf = x_ref[...].astype(jnp.float32)
    o_ref[...] = (1.0 / (1.0 + jnp.exp(-xf))).astype(o_ref.dtype)


def my_sig_module(
    x: jax.Array,
    *,
    target_block_bytes: int | None = None,   # None -> derive from this chip's VMEM
    min_pallas_bytes: int = 64 * 1024,       # below this, launch/DMA overhead dominates
) -> jax.Array:
    """Pallas implementation of MySigModule.forward: elementwise sigmoid."""
    orig_shape = x.shape
    dtype = x.dtype
    itemsize = dtype.itemsize
    n_elems = x.size
    total_bytes = n_elems * itemsize

    # Tiny inputs (e.g. the module's 3x3): let XLA fuse the elementwise op.
    if n_elems == 0 or total_bytes < min_pallas_bytes:
        return 1.0 / (1.0 + jnp.exp(-x))

    vmem_cap = _vmem_capacity_bytes()
    if target_block_bytes is None:
        # ~6 MiB on v7x (64 MiB/TC), 8 MiB on v6e/v5e (128 MiB).  Bigger blocks amortize
        # the ~0.35 us per-grid-step overhead; v7x wants them MORE despite less VMEM.
        target_block_bytes = max(2 * 2**20, min(8 * 2**20, vmem_cap // 10))

    # ---- lane-dense re-tiling: elementwise op => free to pick our own 2-D view ----
    if n_elems % _LANE == 0:
        tile_cols = _LANE
        while tile_cols * 2 <= _MAX_TILE_COLS and n_elems % (tile_cols * 2) == 0:
            tile_cols *= 2
        x2 = x.reshape(-1, tile_cols)               # every block fully lane-dense
    elif x.ndim >= 2:
        x2 = x.reshape(-1, orig_shape[-1])          # ragged lane tail on last col block only
        tile_cols = min(_round_up(x2.shape[1], _LANE), _MAX_TILE_COLS)
    else:
        x2 = x.reshape(1, -1)                       # large ragged 1-D input
        tile_cols = min(_round_up(n_elems, _LANE), _MAX_TILE_COLS)
    R, C = x2.shape

    sublane = _SUBLANE_MULTIPLE.get(itemsize, 8)

    # Row tile: hit ~target_block_bytes of HBM traffic per block, sublane-aligned.
    rows_target = max(sublane, target_block_bytes // (tile_cols * itemsize))
    tile_rows = min(_round_up(R, sublane), _round_up(rows_target, sublane))

    # Shrink-to-fit: 2x double-buffered input + 2x output (input dtype) plus f32
    # temporaries + compiler headroom must stay inside this generation's physical VMEM.
    def _vmem_need(tr: int) -> int:
        blk = tr * tile_cols * itemsize
        blk_f32 = tr * tile_cols * 4
        return 4 * blk + 2 * blk_f32 + (8 << 20)

    while tile_rows > sublane and _vmem_need(tile_rows) > vmem_cap - (4 << 20):
        tile_rows = _round_up(tile_rows // 2, sublane)

    grid_r = pl.cdiv(R, tile_rows)
    grid_c = pl.cdiv(C, tile_cols)

    # Guarantee >=2 grid steps: feeds both v7x TensorCores and restores DMA/compute
    # overlap on mid-size tensors that would otherwise fit in a single block.
    if grid_r * grid_c == 1 and R > sublane:
        tile_rows = _round_up((R + 1) // 2, sublane)
        grid_r = pl.cdiv(R, tile_rows)

    grid = (grid_r, grid_c)

    vmem_limit = int(min(vmem_cap - (4 << 20), max(32 << 20, _vmem_need(tile_rows))))

    y2 = pl.pallas_call(
        _sigmoid_kernel,
        out_shape=jax.ShapeDtypeStruct((R, C), dtype),
        grid_spec=pl.GridSpec(
            grid=grid,
            in_specs=[pl.BlockSpec((tile_rows, tile_cols), lambda i, j: (i, j))],
            out_specs=pl.BlockSpec((tile_rows, tile_cols), lambda i, j: (i, j)),
        ),
        compiler_params=pltpu.CompilerParams(
            # Both axes independent -> megacore sharding across the two v7x TensorCores.
            dimension_semantics=("parallel", "parallel"),
            vmem_limit_bytes=vmem_limit,
        ),
    )(x2)
    return y2.reshape(orig_shape)


if __name__ == "__main__":
    key = jax.random.PRNGKey(0)
    k1, k2, k3 = jax.random.split(key, 3)

    # 1) Pallas path, f32: 256x1024 (1 MiB) re-tiled to a lane-dense (128, 2048) view;
    #    explicit 256 KiB blocks -> grid (4, 1), multiple parallel steps.
    x_f32 = jax.random.normal(k1, (256, 1024), dtype=jnp.float32)
    y_f32 = jax.block_until_ready(my_sig_module(x_f32, target_block_bytes=256 * 1024))
    ref_f32 = 1.0 / (1.0 + jnp.exp(-x_f32))
    assert y_f32.shape == x_f32.shape and y_f32.dtype == x_f32.dtype
    assert jnp.allclose(y_f32, ref_f32, atol=1e-5, rtol=1e-5)   # exact reciprocal now

    # 2) Ragged last dim (160) + default big blocks: N = 300*160 is a multiple of 128,
    #    so it re-tiles to a lane-dense 128-wide view; whole tensor fits one block, so
    #    the ">=2 grid steps" split kicks in (grid (2, 1)).
    x_rag = jax.random.normal(k2, (300, 160), dtype=jnp.float32)
    y_rag = jax.block_until_ready(my_sig_module(x_rag))
    ref_rag = 1.0 / (1.0 + jnp.exp(-x_rag))
    assert y_rag.shape == x_rag.shape
    assert jnp.allclose(y_rag, ref_rag, atol=1e-5, rtol=1e-5)

    # 3) bf16: 16-row sublane alignment + f32 intermediates, exact divide.
    x_bf16 = jax.random.normal(k3, (256, 512), dtype=jnp.float32).astype(jnp.bfloat16)
    y_bf16 = jax.block_until_ready(my_sig_module(x_bf16, target_block_bytes=256 * 1024))
    ref_bf16 = 1.0 / (1.0 + jnp.exp(-x_bf16.astype(jnp.float32)))
    assert y_bf16.dtype == jnp.bfloat16
    assert jnp.allclose(y_bf16.astype(jnp.float32), ref_bf16, atol=8e-3, rtol=8e-3)

    # 4) Module-faithful tiny input (torch.ones(3, 3)) -> XLA fallback path.
    x_tiny = jnp.ones((3, 3), dtype=jnp.float32)
    y_tiny = jax.block_until_ready(my_sig_module(x_tiny))
    assert jnp.allclose(y_tiny, 1.0 / (1.0 + jnp.exp(-x_tiny)), atol=1e-6)

    print("KERNEL_OK")
</pallas_src>

<mosaic_0001>
module attributes {stable_mosaic.version = 11 : i64} {
  func.func @_sigmoid_kernel(%arg0: i32, %arg1: i32, %arg2: memref<32x2048xf32, #tpu.memory_space<vmem>>, %arg3: memref<32x2048xf32, #tpu.memory_space<vmem>>) attributes {dimension_semantics = [#tpu.dimension_semantics<parallel>, #tpu.dimension_semantics<parallel>], iteration_bounds = array<i64: 4, 1>, scalar_prefetch = 0 : i64, scratch_operands = 0 : i64, tpu.core_type = #tpu.core_type<tc>, window_params = [{transform_indices = @transform_0, window_bounds = array<i64: 32, 2048>}, {transform_indices = @transform_1, window_bounds = array<i64: 32, 2048>}]} {
    %c0 = arith.constant 0 : index
    %c0_0 = arith.constant 0 : index
    %0 = vector.load %arg2[%c0, %c0_0] : memref<32x2048xf32, #tpu.memory_space<vmem>>, vector<32x2048xf32>
    %cst = arith.constant 0.000000e+00 : f32
    %1 = vector.broadcast %cst : f32 to vector<32x2048xf32>
    %2 = arith.subf %1, %0 : vector<32x2048xf32>
    %3 = math.exp %2 : vector<32x2048xf32>
    %cst_1 = arith.constant 1.000000e+00 : f32
    %4 = vector.broadcast %cst_1 : f32 to vector<32x2048xf32>
    %5 = arith.addf %4, %3 : vector<32x2048xf32>
    %cst_2 = arith.constant 1.000000e+00 : f32
    %6 = vector.broadcast %cst_2 : f32 to vector<32x2048xf32>
    %7 = arith.divf %6, %5 : vector<32x2048xf32>
    %c0_3 = arith.constant 0 : index
    %c0_4 = arith.constant 0 : index
    %8 = vector.load %arg3[%c0_3, %c0_4] : memref<32x2048xf32, #tpu.memory_space<vmem>>, vector<32x2048xf32>
    tpu.vector_store %arg3[%c0_3, %c0_4], %7 {strides = array<i32>} : memref<32x2048xf32, #tpu.memory_space<vmem>>, vector<32x2048xf32>,
    return
  }
  func.func @transform_0(%arg0: i32, %arg1: i32) -> (i32, i32) {
    %c0_i32 = arith.constant 0 : i32
    return %arg0, %arg1 : i32, i32
  }
  func.func @transform_1(%arg0: i32, %arg1: i32) -> (i32, i32) {
    %c0_i32 = arith.constant 0 : i32
    return %arg0, %arg1 : i32, i32
  }
}

</mosaic_0001>

<bundles_post_ra>
// kernel: tpu_custom_call.1
= control target key start
LH: loop header
LB: loop body
LE: loop exit
PB: predicated region body
PF: predicated region fallthrough
CT: control target
= control target key end

     0   :  { %6 = vsyncpa [#allocation3], 0  ;;  %s1524_s0 = inlined_call_operand.hbm [shape: f32[128,2048], index: 0, kind: input, shape index: {}]   ;;  %s1525_s1 = inlined_call_operand.hbm [shape: f32[128,2048], index: 1, kind: output, shape index: {}]  }
   0x1   :  { %8 = vsyncpa [#allocation3 + $0x1], 0 }
   0x2   :  { %9 = vsyncpa [#allocation4], 0 }
   0x3   :  { %11 = vsyncpa [#allocation4 + $0x1], 0  ;;  %s1243_s6 = smov 0   ;;  %s1245_s7 = smov 0  }
   0x4   :  { %s1247_s8 = smov 0   ;;  %s1249_s9 = smov 0  }
   0x5   :  { %s1251_s10 = smov 0   ;;  %s1253_s11 = smov 0  }
   0x6 LB: > { %s774_s12 = sadd.s32 4294967295, %s1225_s11   ;;  %s775_s13 = sadd.s32 4294967294, %s1225_s11   ;;  %s1225_s11 = sphi %s1253_s11, %s17_s11   ;;  %s1221_s10 = sphi %s1251_s10, %s1535_s10   ;;  %s1217_s9 = sphi %s1249_s9, %s1534_s9   ;;  %s1213_s8 = sphi %s1247_s8, %s1533_s8   ;;  %s1209_s7 = sphi %s1245_s7, %s1532_s7   ;;  %s1205_s6 = sphi %s1243_s6, %s1531_s6  }
   0x7   : > { %s29_s14 = sadd.s32 1, %s1221_s10  ;;  %s38_s15 = sadd.s32 1, %s1213_s8 }
   0x8   : > { %p31_p0 = scmp.ge.s32.totalorder %s29_s14, 4  ;;  %p45_p1 = scmp.ne.s32.totalorder %s1213_s8, %s1209_s7 }
   0x9   : > { %p46_p2 = scmp.eq.s32.totalorder %s1225_s11, 0  ;;  %p51_p3 = scmp.ne.s32.totalorder %s1209_s7, %s1205_s6 }
   0xa   : > { %s1537_s14 = smov (%p31_p0, %s29_s14), 0  ;;  %p52_p5 = scmp.eq.s32.totalorder %s774_s12, 0 }
   0xb   : > { %p1284_p4 = por %p46_p2, %p45_p1  ;;  %s33_s17 = ssub.s32 %s1221_s10, %s1537_s14 }
   0xc   : > { %p77_p6 = scmp.eq.s32.totalorder %s774_s12, 3  ;;  %p36_p7 = scmp.eq.s32.totalorder %s33_s17, 0 }
   0xd   : > { %p1290_p8 = por %p52_p5, %p51_p3  ;;  %p83_p10 = scmp.eq.s32.totalorder %s775_s13, 3 }
   0xe   : > { %p1294_p9 = por %p77_p6, %p45_p1  ;;  %p807_p12 = scmp.lt.s32.totalorder %s1225_s11, 4 }
   0xf   : > { %s1299_s20 = scalar_select %p36_p7, %s1213_s8, %s38_s15  }
  0x10   : > { %p1301_p11 = por %p83_p10, %p51_p3  ;;  %s103_s22 = sand.u32 1, %s1213_s8  }
  0x11   : > { %s778_s23 = sshll.u32 %s103_s22, 9  ;;  %s792_s24 = sshll.u32 %s1221_s10, 13 }
  0x12   : > { %s116_s27 = scalar_lea.hbm %s1524_s0, %s792_s24  ;;  %s107_s28 = scalar_lea.vmem [#allocation2], %s778_s23 }
  0x13   : > { %s117_s29 = sshll.u32 %s107_s28, 4  ;;  %p1313_p13 = pnand %p807_p12, %p1284_p4  ;;  %s118_s29 = int_to_ptr.vmem [resolvable:$true] %s117_s29 }
  0x14   : > { %p782_p0 = scmp.ge.s32.totalorder %s1225_s11, 1  ;;  %s104_s2 = scalar_lea.sflag [#allocation3], %s103_s22 }
  0x15   : > { %p1119_p1 = pneg %p1313_p13  ;;  %s1130_s3 = scalar_lea.vmem %s118_s29, 8192 }
  0x16   : > { %p1131_p2 = scmp.ne.s32.totalorder %s118_s29, %s1130_s3  ;;  %s1227_s4 = smov [#allocation2]  }
  0x17   : > { %s1135_s5 = sshll.u32 %s1227_s4, 4  ;;  %s1136_s5 = int_to_ptr.vmem [resolvable:$false] %s1135_s5 }
  0x18   : > { %p1133_p3 = pnand %p1131_p2, %p1119_p1  ;;  %s1137_s12 = scalar_lea.vmem %s1136_s5, 16384 }
  0x19   : > { %p1138_p6 = scmp.lt.s32.totalorder %s118_s29, %s1136_s5  ;;  %p1139_p7 = scmp.lt.s32.totalorder %s1137_s12, %s1130_s3 }
  0x1a   : > { %p1134_p5 = pneg %p1133_p3 }
  0x1b   : > { %p1140_p10 = por %p1139_p7, %p1138_p6 }
  0x1d   : > { %p1141_p4 = pnand %p1140_p10, %p1134_p5 }
  0x1f   : > { %1144 = shalt.err (!%p1141_p4)
}
  0x20   : > { %s1228_s13 = smov 2048   ;;  %s1229_s15 = smov 128  }
  0x21   : > { %802 = dma.hbm_to_vmem [thread:$0]  (!%p1313_p13), %s116_s27, 8192, %s118_s29, %s104_s2, %s1228_s13, %s1228_s13, %s1229_s15  }
  0x22   : > { %p125_p12 = scmp.lt.s32.totalorder %s1225_s11, 5 }
  0x24   : > { %p126_p1 = pnand %p782_p0, %p125_p12 }
  0x25   : > { %s1326_s16 = sand.u32 (!%p126_p1), 1, %s1209_s7  }
  0x26   : > { %129 = sbr.rel (%p126_p1) target bundleno = 204 (0xcc), region = 24  ;;  %s783_s17 = sshll.u32 (!%p126_p1), %s1326_s16, 9 }
  0x27   : > { %s132_s22 = scalar_lea.sflag (!%p126_p1), [#allocation3], %s1326_s16  ;;  %s1332_s23 = scalar_lea.vmem (!%p126_p1), [#allocation2], %s783_s17 }
  0x2b   : > { %1196 = dma.done.wait (%p1290_p8), %s132_s22, 8192  }
  0x2c   : > { %1198 = vsyncadd (%p1290_p8), %s132_s22, 4294959104  ;;  %v158_v0 = vld [vmem:[%s1332_s23] sm:$0xff]  ;;  %v159_v1 = vld [vmem:[%s1332_s23 + $0x8] sm:$0xff]  ;;  %s1365_s18 = scalar_lea.vmem [#allocation5], %s783_s17  ;;  %s794_s24 = sshll.u32 %s1217_s9, 13 }
  0x2d   : > { %v160_v2 = vld [vmem:[%s1332_s23 + $0x10] sm:$0xff]  ;;  %v222_v3 = vsub.f32 0.0, %v158_v0  ;;  %v223_v4 = vsub.f32 0.0, %v159_v1  ;;  %v161_v6 = vld [vmem:[%s1332_s23 + $0x18] sm:$0xff]  ;;  %v162_v7 = vld [vmem:[%s1332_s23 + $0x20] sm:$0xff]  ;;  %s687_s25 = sshll.u32 %s1365_s18, 4  ;;  %s1472_s28 = scalar_lea.hbm %s1525_s1, %s794_s24  ;;  %s1474_s25 = int_to_ptr.vmem [resolvable:$true] %s687_s25 }
  0x2e   : > { %v224_v5 = vsub.f32 0.0, %v160_v2  ;;  %v163_v8 = vld [vmem:[%s1332_s23 + $0x28] sm:$0xff]  ;;  %v225_v9 = vsub.f32 0.0, %v161_v6  ;;  %v226_v10 = vsub.f32 0.0, %v162_v7  ;;  %v164_v12 = vld [vmem:[%s1332_s23 + $0x30] sm:$0xff]  ;;  %v165_v13 = vld [vmem:[%s1332_s23 + $0x38] sm:$0xff] }
  0x2f   : > { %v227_v11 = vsub.f32 0.0, %v163_v8  ;;  %v166_v14 = vld [vmem:[%s1332_s23 + $0x40] sm:$0xff]  ;;  %v286_v15 = vmul.f32 1.442695, %v222_v3  ;;  %v288_v16 = vmul.f32 1.442695, %v223_v4 }
  0x30   : > { %v290_v17 = vmul.f32 1.442695, %v224_v5  ;;  %v292_v18 = vmul.f32 1.442695, %v225_v9  ;;  %v294_v19 = vmul.f32 1.442695, %v226_v10 }
  0x31   : > { %861 = vpow2.f32 %v286_v15  ;;  %v228_v20 = vsub.f32 0.0, %v164_v12  ;;  %v229_v21 = vsub.f32 0.0, %v165_v13  ;;  %v230_v22 = vsub.f32 0.0, %v166_v14  ;;  %v167_v23 = vld [vmem:[%s1332_s23 + $0x48] sm:$0xff]  ;;  %v168_v24 = vld [vmem:[%s1332_s23 + $0x50] sm:$0xff]  ;;  %v169_v25 = vld [vmem:[%s1332_s23 + $0x58] sm:$0xff] }
  0x32   : > { %863 = vpow2.f32 %v288_v16  ;;  %v296_v26 = vmul.f32 1.442695, %v227_v11  ;;  %v231_v27 = vsub.f32 0.0, %v167_v23  ;;  %v170_v28 = vld [vmem:[%s1332_s23 + $0x60] sm:$0xff]  ;;  %v232_v30 = vsub.f32 0.0, %v168_v24  ;;  %v171_v31 = vld [vmem:[%s1332_s23 + $0x68] sm:$0xff] }
  0x33   : > { %865 = vpow2.f32 %v290_v17  ;;  %v298_v29 = vmul.f32 1.442695, %v228_v20  ;;  %v300_v32 = vmul.f32 1.442695, %v229_v21  ;;  %v233_v33 = vsub.f32 0.0, %v169_v25  ;;  %v172_v34 = vld [vmem:[%s1332_s23 + $0x70] sm:$0xff] }
  0x34   : > { %867 = vpow2.f32 %v292_v18  ;;  %v302_v35 = vmul.f32 1.442695, %v230_v22  ;;  %v234_v36 = vsub.f32 0.0, %v170_v28  ;;  %v173_v37 = vld [vmem:[%s1332_s23 + $0x78] sm:$0xff]  ;;  %v304_v38 = vmul.f32 1.442695, %v231_v27 }
  0x35   : > { %869 = vpow2.f32 %v294_v19  ;;  %v235_v39 = vsub.f32 0.0, %v171_v31  ;;  %v306_v40 = vmul.f32 1.442695, %v232_v30  ;;  %v236_v41 = vsub.f32 0.0, %v172_v34  ;;  %v174_v1 = vld [vmem:[%s1332_s23 + $0x80] sm:$0xff]  ;;  %v175_v4 = vld [vmem:[%s1332_s23 + $0x88] sm:$0xff] }
  0x36   : > { %871 = vpow2.f32 %v296_v26  ;;  %v308_v42 = vmul.f32 1.442695, %v233_v33  ;;  %v237_v43 = vsub.f32 0.0, %v173_v37  ;;  %v310_v44 = vmul.f32 1.442695, %v234_v36  ;;  %v176_v7 = vld [vmem:[%s1332_s23 + $0x90] sm:$0xff] }
  0x37   : > { %873 = vpow2.f32 %v298_v29  ;;  %v312_v45 = vmul.f32 1.442695, %v235_v39  ;;  %v314_v46 = vmul.f32 1.442695, %v236_v41  ;;  %v238_v10 = vsub.f32 0.0, %v174_v1  ;;  %v177_v11 = vld [vmem:[%s1332_s23 + $0x98] sm:$0xff] }
  0x38   : > { %875 = vpow2.f32 %v300_v32  ;;  %v316_v47 = vmul.f32 1.442695, %v237_v43  ;;  %v239_v14 = vsub.f32 0.0, %v175_v4  ;;  %v178_v15 = vld [vmem:[%s1332_s23 + $0xa0] sm:$0xff]  ;;  %v240_v18 = vsub.f32 0.0, %v176_v7  ;;  %v179_v19 = vld [vmem:[%s1332_s23 + $0xa8] sm:$0xff] }
  0x39   : > { %877 = vpow2.f32 %v302_v35  ;;  %v241_v22 = vsub.f32 0.0, %v177_v11  ;;  %v180_v23 = vld [vmem:[%s1332_s23 + $0xb0] sm:$0xff]  ;;  %v318_v26 = vmul.f32 1.442695, %v238_v10  ;;  %v242_v27 = vsub.f32 0.0, %v178_v15  ;;  %v181_v28 = vld [vmem:[%s1332_s23 + $0xb8] sm:$0xff] }
  0x3a   : > { %879 = vpow2.f32 %v304_v38  ;;  %v320_v31 = vmul.f32 1.442695, %v239_v14  ;;  %v243_v32 = vsub.f32 0.0, %v179_v19  ;;  %v182_v33 = vld [vmem:[%s1332_s23 + $0xc0] sm:$0xff]  ;;  %v322_v35 = vmul.f32 1.442695, %v240_v18 }
  0x3b   : > { %881 = vpow2.f32 %v306_v40  ;;  %v244_v36 = vsub.f32 0.0, %v180_v23  ;;  %v183_v37 = vld [vmem:[%s1332_s23 + $0xc8] sm:$0xff]  ;;  %v324_v39 = vmul.f32 1.442695, %v241_v22  ;;  %v245_v40 = vsub.f32 0.0, %v181_v28  ;;  %v184_v41 = vld [vmem:[%s1332_s23 + $0xd0] sm:$0xff] }
  0x3c   : > { %883 = vpow2.f32 %v308_v42  ;;  %v326_v43 = vmul.f32 1.442695, %v242_v27  ;;  %s671_s9 = scalar_lea.sflag [#allocation4], %s1326_s16  ;;  %s1145_s29 = scalar_lea.vmem %s1474_s25, 8192 }
  0x3d   : > { %885 = vpow2.f32 %v310_v44  ;;  %v246_v44 = vsub.f32 0.0, %v182_v33  ;;  %v190_v33 = vld [vmem:[%s1332_s23 + $0x100] sm:$0xff]  ;;  %p1146_p8 = scmp.ne.s32.totalorder %s1474_s25, %s1145_s29  ;;  %s1230_s30 = smov [#allocation5]  }
  0x3e   : > { %v862_v48 = vpop.eup %861  ;;  %887 = vpow2.f32 %v312_v45  ;;  %v185_v45 = vld [vmem:[%s1332_s23 + $0xd8] sm:$0xff]  ;;  %s1149_s2 = sshll.u32 %s1230_s30, 4  ;;  %s1150_s2 = int_to_ptr.vmem [resolvable:$false] %s1149_s2 }
  0x3f   : > { %v864_v49 = vpop.eup %863  ;;  %v414_v50 = vadd.f32 1.0, %v862_v48  ;;  %889 = vpow2.f32 %v314_v46  ;;  %v247_v48 = vsub.f32 0.0, %v183_v37  ;;  %p1147_p13 = pnand %p1146_p8, %p1294_p9  ;;  %s1151_s3 = scalar_lea.vmem %s1150_s2, 16384 }
  0x40   : > { %v866_v51 = vpop.eup %865  ;;  %v415_v52 = vadd.f32 1.0, %v864_v49  ;;  %891 = vpow2.f32 %v316_v47  ;;  %v328_v47 = vmul.f32 1.442695, %v243_v32  ;;  %v186_v49 = vld [vmem:[%s1332_s23 + $0xe0] sm:$0xff]  ;;  %p1152_p2 = scmp.lt.s32.totalorder %s1474_s25, %s1150_s2  ;;  %p1153_p3 = scmp.lt.s32.totalorder %s1151_s3, %s1145_s29 }
  0x41   : > { %v868_v53 = vpop.eup %867  ;;  %893 = vrcp.f32 %v414_v50  ;;  %v416_v54 = vadd.f32 1.0, %v866_v51  ;;  %v330_v51 = vmul.f32 1.442695, %v244_v36  ;;  %v191_v36 = vld [vmem:[%s1332_s23 + $0x108] sm:$0xff]  ;;  %p1148_p0 = pneg %p1147_p13 }
  0x42   : > { %v870_v55 = vpop.eup %869  ;;  %895 = vrcp.f32 %v415_v52  ;;  %v417_v56 = vadd.f32 1.0, %v868_v53  ;;  %v248_v52 = vsub.f32 0.0, %v184_v41  ;;  %v187_v53 = vld [vmem:[%s1332_s23 + $0xe8] sm:$0xff]  ;;  %p1154_p5 = por %p1153_p3, %p1152_p2 }
  0x43   : > { %v872_v57 = vpop.eup %871  ;;  %897 = vrcp.f32 %v416_v54  ;;  %v418_v58 = vadd.f32 1.0, %v870_v55  ;;  %v332_v55 = vmul.f32 1.442695, %v245_v40 }
  0x44   : > { %v874_v59 = vpop.eup %873  ;;  %899 = vrcp.f32 %v417_v56  ;;  %v419_v60 = vadd.f32 1.0, %v872_v57  ;;  %v249_v56 = vsub.f32 0.0, %v185_v45  ;;  %v188_v57 = vld [vmem:[%s1332_s23 + $0xf0] sm:$0xff]  ;;  %p1155_p6 = pnand %p1154_p5, %p1148_p0 }
  0x45   : > { %v876_v61 = vpop.eup %875  ;;  %901 = vrcp.f32 %v418_v58  ;;  %v420_v62 = vadd.f32 1.0, %v874_v59  ;;  %v334_v59 = vmul.f32 1.442695, %v246_v44 }
  0x46   : > { %v878_v63 = vpop.eup %877  ;;  %903 = vrcp.f32 %v419_v60  ;;  %v421_v0 = vadd.f32 1.0, %v876_v61  ;;  %v250_v60 = vsub.f32 0.0, %v186_v49  ;;  %v189_v61 = vld [vmem:[%s1332_s23 + $0xf8] sm:$0xff] }
  0x47   : > { %v880_v2 = vpop.eup %879  ;;  %905 = vrcp.f32 %v420_v62  ;;  %v422_v3 = vadd.f32 1.0, %v878_v63  ;;  %v336_v63 = vmul.f32 1.442695, %v247_v48 }
  0x48   : > { %v882_v5 = vpop.eup %881  ;;  %907 = vrcp.f32 %v421_v0  ;;  %v423_v6 = vadd.f32 1.0, %v880_v2  ;;  %v251_v0 = vsub.f32 0.0, %v187_v53  ;;  %v338_v2 = vmul.f32 1.442695, %v248_v52 }
  0x49   : > { %v884_v8 = vpop.eup %883  ;;  %909 = vrcp.f32 %v422_v3  ;;  %v424_v9 = vadd.f32 1.0, %v882_v5  ;;  %v252_v3 = vsub.f32 0.0, %v188_v57  ;;  %v340_v5 = vmul.f32 1.442695, %v249_v56 }
  0x4a   : > { %v886_v12 = vpop.eup %885  ;;  %911 = vrcp.f32 %v423_v6  ;;  %v425_v13 = vadd.f32 1.0, %v884_v8  ;;  %v253_v6 = vsub.f32 0.0, %v189_v61  ;;  %v342_v8 = vmul.f32 1.442695, %v250_v60  ;;  %v197_v60 = vld [vmem:[%s1332_s23 + $0x138] sm:$0xff] }
  0x4b   : > { %v888_v16 = vpop.eup %887  ;;  %913 = vrcp.f32 %v424_v9  ;;  %v426_v17 = vadd.f32 1.0, %v886_v12  ;;  %v344_v10 = vmul.f32 1.442695, %v251_v0  ;;  %v346_v12 = vmul.f32 1.442695, %v252_v3 }
  0x4c   : > { %v890_v20 = vpop.eup %889  ;;  %915 = vrcp.f32 %v425_v13  ;;  %v427_v21 = vadd.f32 1.0, %v888_v16  ;;  %v348_v14 = vmul.f32 1.442695, %v253_v6 }
  0x4d   : > { %v892_v24 = vpop.eup %891  ;;  %917 = vrcp.f32 %v426_v17  ;;  %v428_v25 = vadd.f32 1.0, %v890_v20 }
  0x4e   : > { %v894_v29 = vpop.eup %893  ;;  %919 = vrcp.f32 %v427_v21  ;;  %v429_v30 = vadd.f32 1.0, %v892_v24 }
  0x4f   : > { %v896_v34 = vpop.eup %895  ;;  %606 = vst [vmem:[%s1365_s18] sm:$0xff] %v894_v29  ;;  %921 = vrcp.f32 %v428_v25 }
  0x50   : > { %v898_v38 = vpop.eup %897  ;;  %607 = vst [vmem:[%s1365_s18 + $0x8] sm:$0xff] %v896_v34  ;;  %923 = vrcp.f32 %v429_v30 }
  0x51   : > { %v900_v42 = vpop.eup %899  ;;  %608 = vst [vmem:[%s1365_s18 + $0x10] sm:$0xff] %v898_v38  ;;  %925 = vpow2.f32 %v318_v26 }
  0x52   : > { %v902_v46 = vpop.eup %901  ;;  %609 = vst [vmem:[%s1365_s18 + $0x18] sm:$0xff] %v900_v42  ;;  %927 = vpow2.f32 %v320_v31  ;;  %v254_v42 = vsub.f32 0.0, %v190_v33 }
  0x53   : > { %v904_v50 = vpop.eup %903  ;;  %610 = vst [vmem:[%s1365_s18 + $0x20] sm:$0xff] %v902_v46  ;;  %929 = vpow2.f32 %v322_v35  ;;  %v255_v46 = vsub.f32 0.0, %v191_v36 }
  0x54   : > { %v906_v54 = vpop.eup %905  ;;  %611 = vst [vmem:[%s1365_s18 + $0x28] sm:$0xff] %v904_v50  ;;  %931 = vpow2.f32 %v324_v39  ;;  %v192_v39 = vld [vmem:[%s1332_s23 + $0x110] sm:$0xff] }
  0x55   : > { %v908_v58 = vpop.eup %907  ;;  %612 = vst [vmem:[%s1365_s18 + $0x30] sm:$0xff] %v906_v54  ;;  %933 = vpow2.f32 %v326_v43  ;;  %v193_v43 = vld [vmem:[%s1332_s23 + $0x118] sm:$0xff]  ;;  %v256_v50 = vsub.f32 0.0, %v192_v39 }
  0x56   : > { %v910_v62 = vpop.eup %909  ;;  %613 = vst [vmem:[%s1365_s18 + $0x38] sm:$0xff] %v908_v58  ;;  %935 = vpow2.f32 %v328_v47  ;;  %v194_v47 = vld [vmem:[%s1332_s23 + $0x120] sm:$0xff]  ;;  %v257_v54 = vsub.f32 0.0, %v193_v43  ;;  %v350_v58 = vmul.f32 1.442695, %v254_v42 }
  0x57   : > { %v912_v1 = vpop.eup %911  ;;  %614 = vst [vmem:[%s1365_s18 + $0x40] sm:$0xff] %v910_v62  ;;  %937 = vpow2.f32 %v330_v51  ;;  %v195_v51 = vld [vmem:[%s1332_s23 + $0x128] sm:$0xff]  ;;  %v354_v3 = vmul.f32 1.442695, %v256_v50 }
  0x58   : > { %v914_v4 = vpop.eup %913  ;;  %615 = vst [vmem:[%s1365_s18 + $0x48] sm:$0xff] %v912_v1  ;;  %939 = vpow2.f32 %v332_v55  ;;  %v196_v55 = vld [vmem:[%s1332_s23 + $0x130] sm:$0xff]  ;;  %v259_v0 = vsub.f32 0.0, %v195_v51  ;;  %v198_v1 = vld [vmem:[%s1332_s23 + $0x140] sm:$0xff] }
  0x59   : > { %v916_v7 = vpop.eup %915  ;;  %616 = vst [vmem:[%s1365_s18 + $0x50] sm:$0xff] %v914_v4  ;;  %941 = vpow2.f32 %v334_v59  ;;  %v258_v59 = vsub.f32 0.0, %v194_v47  ;;  %v260_v4 = vsub.f32 0.0, %v196_v55 }
  0x5a   : > { %v918_v9 = vpop.eup %917  ;;  %617 = vst [vmem:[%s1365_s18 + $0x58] sm:$0xff] %v916_v7  ;;  %943 = vpow2.f32 %v336_v63  ;;  %v352_v63 = vmul.f32 1.442695, %v255_v46  ;;  %v356_v7 = vmul.f32 1.442695, %v257_v54 }
  0x5b   : > { %v920_v11 = vpop.eup %919  ;;  %618 = vst [vmem:[%s1365_s18 + $0x60] sm:$0xff] %v918_v9  ;;  %945 = vpow2.f32 %v338_v2  ;;  %v200_v9 = vld [vmem:[%s1332_s23 + $0x150] sm:$0xff] }
  0x5c   : > { %v922_v13 = vpop.eup %921  ;;  %619 = vst [vmem:[%s1365_s18 + $0x68] sm:$0xff] %v920_v11  ;;  %947 = vpow2.f32 %v340_v5  ;;  %v199_v5 = vld [vmem:[%s1332_s23 + $0x148] sm:$0xff]  ;;  %v358_v11 = vmul.f32 1.442695, %v258_v59 }
  0x5d   : > { %v924_v15 = vpop.eup %923  ;;  %620 = vst [vmem:[%s1365_s18 + $0x70] sm:$0xff] %v922_v13  ;;  %949 = vpow2.f32 %v342_v8  ;;  %v261_v8 = vsub.f32 0.0, %v197_v60  ;;  %v201_v13 = vld [vmem:[%s1332_s23 + $0x158] sm:$0xff] }
  0x5e   : > { %v926_v16 = vpop.eup %925  ;;  %621 = vst [vmem:[%s1365_s18 + $0x78] sm:$0xff] %v924_v15  ;;  %951 = vpow2.f32 %v344_v10  ;;  %v360_v15 = vmul.f32 1.442695, %v259_v0 }
  0x5f   : > { %v928_v17 = vpop.eup %927  ;;  %v430_v18 = vadd.f32 1.0, %v926_v16  ;;  %953 = vpow2.f32 %v346_v12  ;;  %v262_v12 = vsub.f32 0.0, %v198_v1  ;;  %v263_v16 = vsub.f32 0.0, %v199_v5  ;;  %v206_v1 = vld [vmem:[%s1332_s23 + $0x180] sm:$0xff] }
  0x60   : > { %v930_v19 = vpop.eup %929  ;;  %v431_v20 = vadd.f32 1.0, %v928_v17  ;;  %955 = vpow2.f32 %v348_v14  ;;  %v202_v17 = vld [vmem:[%s1332_s23 + $0x160] sm:$0xff] }
  0x61   : > { %v932_v21 = vpop.eup %931  ;;  %957 = vrcp.f32 %v430_v18  ;;  %v432_v22 = vadd.f32 1.0, %v930_v19  ;;  %v362_v19 = vmul.f32 1.442695, %v260_v4  ;;  %v207_v4 = vld [vmem:[%s1332_s23 + $0x188] sm:$0xff] }
  0x62   : > { %v934_v23 = vpop.eup %933  ;;  %959 = vrcp.f32 %v431_v20  ;;  %v433_v24 = vadd.f32 1.0, %v932_v21  ;;  %v264_v20 = vsub.f32 0.0, %v200_v9  ;;  %v203_v21 = vld [vmem:[%s1332_s23 + $0x168] sm:$0xff] }
  0x63   : > { %v936_v25 = vpop.eup %935  ;;  %961 = vrcp.f32 %v432_v22  ;;  %v434_v26 = vadd.f32 1.0, %v934_v23  ;;  %v364_v23 = vmul.f32 1.442695, %v261_v8 }
  0x64   : > { %v938_v27 = vpop.eup %937  ;;  %963 = vrcp.f32 %v433_v24  ;;  %v435_v28 = vadd.f32 1.0, %v936_v25  ;;  %v265_v24 = vsub.f32 0.0, %v201_v13  ;;  %v204_v25 = vld [vmem:[%s1332_s23 + $0x170] sm:$0xff] }
  0x65   : > { %v940_v29 = vpop.eup %939  ;;  %965 = vrcp.f32 %v434_v26  ;;  %v436_v30 = vadd.f32 1.0, %v938_v27  ;;  %v366_v27 = vmul.f32 1.442695, %v262_v12 }
  0x66   : > { %v942_v31 = vpop.eup %941  ;;  %967 = vrcp.f32 %v435_v28  ;;  %v437_v32 = vadd.f32 1.0, %v940_v29  ;;  %v266_v28 = vsub.f32 0.0, %v202_v17  ;;  %v205_v29 = vld [vmem:[%s1332_s23 + $0x178] sm:$0xff] }
  0x67   : > { %v944_v34 = vpop.eup %943  ;;  %969 = vrcp.f32 %v436_v30  ;;  %v438_v35 = vadd.f32 1.0, %v942_v31  ;;  %v368_v31 = vmul.f32 1.442695, %v263_v16 }
  0x68   : > { %v946_v37 = vpop.eup %945  ;;  %971 = vrcp.f32 %v437_v32  ;;  %v439_v38 = vadd.f32 1.0, %v944_v34  ;;  %v267_v32 = vsub.f32 0.0, %v203_v21  ;;  %v370_v34 = vmul.f32 1.442695, %v264_v20 }
  0x69   : > { %v948_v40 = vpop.eup %947  ;;  %973 = vrcp.f32 %v438_v35  ;;  %v440_v41 = vadd.f32 1.0, %v946_v37  ;;  %v268_v35 = vsub.f32 0.0, %v204_v25  ;;  %v372_v37 = vmul.f32 1.442695, %v265_v24 }
  0x6a   : > { %v950_v44 = vpop.eup %949  ;;  %975 = vrcp.f32 %v439_v38  ;;  %v441_v45 = vadd.f32 1.0, %v948_v40  ;;  %v269_v38 = vsub.f32 0.0, %v205_v29  ;;  %v374_v40 = vmul.f32 1.442695, %v266_v28  ;;  %v213_v28 = vld [vmem:[%s1332_s23 + $0x1b8] sm:$0xff] }
  0x6b   : > { %v952_v48 = vpop.eup %951  ;;  %977 = vrcp.f32 %v440_v41  ;;  %v442_v49 = vadd.f32 1.0, %v950_v44  ;;  %v376_v42 = vmul.f32 1.442695, %v267_v32  ;;  %v378_v44 = vmul.f32 1.442695, %v268_v35 }
  0x6c   : > { %v954_v52 = vpop.eup %953  ;;  %979 = vrcp.f32 %v441_v45  ;;  %v443_v53 = vadd.f32 1.0, %v952_v48  ;;  %v380_v46 = vmul.f32 1.442695, %v269_v38 }
  0x6d   : > { %v956_v56 = vpop.eup %955  ;;  %981 = vrcp.f32 %v442_v49  ;;  %v444_v57 = vadd.f32 1.0, %v954_v52 }
  0x6e   : > { %v958_v61 = vpop.eup %957  ;;  %983 = vrcp.f32 %v443_v53  ;;  %v445_v62 = vadd.f32 1.0, %v956_v56 }
  0x6f   : > { %v960_v2 = vpop.eup %959  ;;  %622 = vst [vmem:[%s1365_s18 + $0x80] sm:$0xff] %v958_v61  ;;  %985 = vrcp.f32 %v444_v57 }
  0x70   : > { %v962_v6 = vpop.eup %961  ;;  %623 = vst [vmem:[%s1365_s18 + $0x88] sm:$0xff] %v960_v2  ;;  %987 = vrcp.f32 %v445_v62 }
  0x71   : > { %v964_v10 = vpop.eup %963  ;;  %624 = vst [vmem:[%s1365_s18 + $0x90] sm:$0xff] %v962_v6  ;;  %989 = vpow2.f32 %v350_v58 }
  0x72   : > { %v966_v14 = vpop.eup %965  ;;  %625 = vst [vmem:[%s1365_s18 + $0x98] sm:$0xff] %v964_v10  ;;  %991 = vpow2.f32 %v352_v63  ;;  %v270_v10 = vsub.f32 0.0, %v206_v1 }
  0x73   : > { %v968_v18 = vpop.eup %967  ;;  %626 = vst [vmem:[%s1365_s18 + $0xa0] sm:$0xff] %v966_v14  ;;  %993 = vpow2.f32 %v354_v3  ;;  %v271_v14 = vsub.f32 0.0, %v207_v4 }
  0x74   : > { %v970_v22 = vpop.eup %969  ;;  %627 = vst [vmem:[%s1365_s18 + $0xa8] sm:$0xff] %v968_v18  ;;  %995 = vpow2.f32 %v356_v7  ;;  %v208_v7 = vld [vmem:[%s1332_s23 + $0x190] sm:$0xff] }
  0x75   : > { %v972_v26 = vpop.eup %971  ;;  %628 = vst [vmem:[%s1365_s18 + $0xb0] sm:$0xff] %v970_v22  ;;  %997 = vpow2.f32 %v358_v11  ;;  %v209_v11 = vld [vmem:[%s1332_s23 + $0x198] sm:$0xff]  ;;  %v272_v18 = vsub.f32 0.0, %v208_v7 }
  0x76   : > { %v974_v30 = vpop.eup %973  ;;  %629 = vst [vmem:[%s1365_s18 + $0xb8] sm:$0xff] %v972_v26  ;;  %999 = vpow2.f32 %v360_v15  ;;  %v210_v15 = vld [vmem:[%s1332_s23 + $0x1a0] sm:$0xff]  ;;  %v273_v22 = vsub.f32 0.0, %v209_v11  ;;  %v382_v26 = vmul.f32 1.442695, %v270_v10 }
  0x77   : > { %v976_v33 = vpop.eup %975  ;;  %630 = vst [vmem:[%s1365_s18 + $0xc0] sm:$0xff] %v974_v30  ;;  %1001 = vpow2.f32 %v362_v19  ;;  %v211_v19 = vld [vmem:[%s1332_s23 + $0x1a8] sm:$0xff]  ;;  %v386_v35 = vmul.f32 1.442695, %v272_v18 }
  0x78   : > { %v978_v36 = vpop.eup %977  ;;  %631 = vst [vmem:[%s1365_s18 + $0xc8] sm:$0xff] %v976_v33  ;;  %1003 = vpow2.f32 %v364_v23  ;;  %v212_v23 = vld [vmem:[%s1332_s23 + $0x1b0] sm:$0xff]  ;;  %v275_v32 = vsub.f32 0.0, %v211_v19  ;;  %v214_v33 = vld [vmem:[%s1332_s23 + $0x1c0] sm:$0xff] }
  0x79   : > { %v980_v39 = vpop.eup %979  ;;  %632 = vst [vmem:[%s1365_s18 + $0xd0] sm:$0xff] %v978_v36  ;;  %1005 = vpow2.f32 %v366_v27  ;;  %v274_v27 = vsub.f32 0.0, %v210_v15  ;;  %v276_v36 = vsub.f32 0.0, %v212_v23 }
  0x7a   : > { %v982_v41 = vpop.eup %981  ;;  %633 = vst [vmem:[%s1365_s18 + $0xd8] sm:$0xff] %v980_v39  ;;  %1007 = vpow2.f32 %v368_v31  ;;  %v384_v31 = vmul.f32 1.442695, %v271_v14  ;;  %v388_v39 = vmul.f32 1.442695, %v273_v22 }
  0x7b   : > { %v984_v43 = vpop.eup %983  ;;  %634 = vst [vmem:[%s1365_s18 + $0xe0] sm:$0xff] %v982_v41  ;;  %1009 = vpow2.f32 %v370_v34  ;;  %v216_v41 = vld [vmem:[%s1332_s23 + $0x1d0] sm:$0xff] }
  0x7c   : > { %v986_v45 = vpop.eup %985  ;;  %635 = vst [vmem:[%s1365_s18 + $0xe8] sm:$0xff] %v984_v43  ;;  %1011 = vpow2.f32 %v372_v37  ;;  %v215_v37 = vld [vmem:[%s1332_s23 + $0x1c8] sm:$0xff]  ;;  %v390_v43 = vmul.f32 1.442695, %v274_v27 }
  0x7d   : > { %v988_v47 = vpop.eup %987  ;;  %636 = vst [vmem:[%s1365_s18 + $0xf0] sm:$0xff] %v986_v45  ;;  %1013 = vpow2.f32 %v374_v40  ;;  %v277_v40 = vsub.f32 0.0, %v213_v28  ;;  %v217_v45 = vld [vmem:[%s1332_s23 + $0x1d8] sm:$0xff] }
  0x7e   : > { %v990_v48 = vpop.eup %989  ;;  %637 = vst [vmem:[%s1365_s18 + $0xf8] sm:$0xff] %v988_v47  ;;  %1015 = vpow2.f32 %v376_v42  ;;  %v392_v47 = vmul.f32 1.442695, %v275_v32 }
  0x7f   : > { %v992_v49 = vpop.eup %991  ;;  %v446_v50 = vadd.f32 1.0, %v990_v48  ;;  %1017 = vpow2.f32 %v378_v44  ;;  %v278_v44 = vsub.f32 0.0, %v214_v33  ;;  %v279_v48 = vsub.f32 0.0, %v215_v37 }
  0x80   : > { %v994_v51 = vpop.eup %993  ;;  %v447_v52 = vadd.f32 1.0, %v992_v49  ;;  %1019 = vpow2.f32 %v380_v46  ;;  %v218_v49 = vld [vmem:[%s1332_s23 + $0x1e0] sm:$0xff] }
  0x81   : > { %v996_v53 = vpop.eup %995  ;;  %1021 = vrcp.f32 %v446_v50  ;;  %v448_v54 = vadd.f32 1.0, %v994_v51  ;;  %v394_v51 = vmul.f32 1.442695, %v276_v36 }
  0x82   : > { %v998_v55 = vpop.eup %997  ;;  %1023 = vrcp.f32 %v447_v52  ;;  %v449_v56 = vadd.f32 1.0, %v996_v53  ;;  %v280_v52 = vsub.f32 0.0, %v216_v41  ;;  %v219_v53 = vld [vmem:[%s1332_s23 + $0x1e8] sm:$0xff] }
  0x83   : > { %v1000_v57 = vpop.eup %999  ;;  %1025 = vrcp.f32 %v448_v54  ;;  %v450_v58 = vadd.f32 1.0, %v998_v55  ;;  %v396_v55 = vmul.f32 1.442695, %v277_v40 }
  0x84   : > { %v1002_v59 = vpop.eup %1001  ;;  %1027 = vrcp.f32 %v449_v56  ;;  %v451_v60 = vadd.f32 1.0, %v1000_v57  ;;  %v281_v56 = vsub.f32 0.0, %v217_v45  ;;  %v220_v57 = vld [vmem:[%s1332_s23 + $0x1f0] sm:$0xff] }
  0x85   : > { %v1004_v61 = vpop.eup %1003  ;;  %1029 = vrcp.f32 %v450_v58  ;;  %v452_v62 = vadd.f32 1.0, %v1002_v59  ;;  %v398_v59 = vmul.f32 1.442695, %v278_v44 }
  0x86   : > { %v1006_v63 = vpop.eup %1005  ;;  %1031 = vrcp.f32 %v451_v60  ;;  %v453_v0 = vadd.f32 1.0, %v1004_v61  ;;  %v282_v60 = vsub.f32 0.0, %v218_v49  ;;  %v221_v61 = vld [vmem:[%s1332_s23 + $0x1f8] sm:$0xff] }
  0x87   : > { %v1008_v2 = vpop.eup %1007  ;;  %1033 = vrcp.f32 %v452_v62  ;;  %v454_v3 = vadd.f32 1.0, %v1006_v63  ;;  %v400_v63 = vmul.f32 1.442695, %v279_v48 }
  0x88   : > { %v1010_v5 = vpop.eup %1009  ;;  %1035 = vrcp.f32 %v453_v0  ;;  %v455_v6 = vadd.f32 1.0, %v1008_v2  ;;  %v283_v0 = vsub.f32 0.0, %v219_v53  ;;  %v402_v2 = vmul.f32 1.442695, %v280_v52 }
  0x89   : > { %v1012_v8 = vpop.eup %1011  ;;  %1037 = vrcp.f32 %v454_v3  ;;  %v456_v9 = vadd.f32 1.0, %v1010_v5  ;;  %v284_v3 = vsub.f32 0.0, %v220_v57  ;;  %v404_v5 = vmul.f32 1.442695, %v281_v56 }
  0x8a   : > { %v1014_v12 = vpop.eup %1013  ;;  %1039 = vrcp.f32 %v455_v6  ;;  %v457_v13 = vadd.f32 1.0, %v1012_v8  ;;  %v285_v6 = vsub.f32 0.0, %v221_v61  ;;  %v406_v8 = vmul.f32 1.442695, %v282_v60 }
  0x8b   : > { %v1016_v16 = vpop.eup %1015  ;;  %1041 = vrcp.f32 %v456_v9  ;;  %v458_v17 = vadd.f32 1.0, %v1014_v12  ;;  %v408_v10 = vmul.f32 1.442695, %v283_v0  ;;  %v410_v12 = vmul.f32 1.442695, %v284_v3 }
  0x8c   : > { %v1018_v20 = vpop.eup %1017  ;;  %1043 = vrcp.f32 %v457_v13  ;;  %v459_v21 = vadd.f32 1.0, %v1016_v16  ;;  %v412_v14 = vmul.f32 1.442695, %v285_v6 }
  0x8d   : > { %v1020_v24 = vpop.eup %1019  ;;  %1045 = vrcp.f32 %v458_v17  ;;  %v460_v25 = vadd.f32 1.0, %v1018_v20 }
  0x8e   : > { %v1022_v29 = vpop.eup %1021  ;;  %1047 = vrcp.f32 %v459_v21  ;;  %v461_v30 = vadd.f32 1.0, %v1020_v24 }
  0x8f   : > { %v1024_v34 = vpop.eup %1023  ;;  %638 = vst [vmem:[%s1365_s18 + $0x100] sm:$0xff] %v1022_v29  ;;  %1049 = vrcp.f32 %v460_v25 }
  0x90   : > { %v1026_v38 = vpop.eup %1025  ;;  %639 = vst [vmem:[%s1365_s18 + $0x108] sm:$0xff] %v1024_v34  ;;  %1051 = vrcp.f32 %v461_v30 }
  0x91   : > { %v1028_v42 = vpop.eup %1027  ;;  %640 = vst [vmem:[%s1365_s18 + $0x110] sm:$0xff] %v1026_v38  ;;  %1053 = vpow2.f32 %v382_v26 }
  0x92   : > { %v1030_v46 = vpop.eup %1029  ;;  %641 = vst [vmem:[%s1365_s18 + $0x118] sm:$0xff] %v1028_v42  ;;  %1055 = vpow2.f32 %v384_v31 }
  0x93   : > { %v1032_v50 = vpop.eup %1031  ;;  %642 = vst [vmem:[%s1365_s18 + $0x120] sm:$0xff] %v1030_v46  ;;  %1057 = vpow2.f32 %v386_v35 }
  0x94   : > { %v1034_v54 = vpop.eup %1033  ;;  %643 = vst [vmem:[%s1365_s18 + $0x128] sm:$0xff] %v1032_v50  ;;  %1059 = vpow2.f32 %v388_v39 }
  0x95   : > { %v1036_v58 = vpop.eup %1035  ;;  %644 = vst [vmem:[%s1365_s18 + $0x130] sm:$0xff] %v1034_v54  ;;  %1061 = vpow2.f32 %v390_v43 }
  0x96   : > { %v1038_v62 = vpop.eup %1037  ;;  %645 = vst [vmem:[%s1365_s18 + $0x138] sm:$0xff] %v1036_v58  ;;  %1063 = vpow2.f32 %v392_v47 }
  0x97   : > { %v1040_v1 = vpop.eup %1039  ;;  %646 = vst [vmem:[%s1365_s18 + $0x140] sm:$0xff] %v1038_v62  ;;  %1065 = vpow2.f32 %v394_v51 }
  0x98   : > { %v1042_v4 = vpop.eup %1041  ;;  %647 = vst [vmem:[%s1365_s18 + $0x148] sm:$0xff] %v1040_v1  ;;  %1067 = vpow2.f32 %v396_v55 }
  0x99   : > { %v1044_v7 = vpop.eup %1043  ;;  %648 = vst [vmem:[%s1365_s18 + $0x150] sm:$0xff] %v1042_v4  ;;  %1069 = vpow2.f32 %v398_v59 }
  0x9a   : > { %v1046_v9 = vpop.eup %1045  ;;  %649 = vst [vmem:[%s1365_s18 + $0x158] sm:$0xff] %v1044_v7  ;;  %1071 = vpow2.f32 %v400_v63 }
  0x9b   : > { %v1048_v11 = vpop.eup %1047  ;;  %650 = vst [vmem:[%s1365_s18 + $0x160] sm:$0xff] %v1046_v9  ;;  %1073 = vpow2.f32 %v402_v2 }
  0x9c   : > { %v1050_v13 = vpop.eup %1049  ;;  %651 = vst [vmem:[%s1365_s18 + $0x168] sm:$0xff] %v1048_v11  ;;  %1075 = vpow2.f32 %v404_v5 }
  0x9d   : > { %v1052_v15 = vpop.eup %1051  ;;  %652 = vst [vmem:[%s1365_s18 + $0x170] sm:$0xff] %v1050_v13  ;;  %1077 = vpow2.f32 %v406_v8 }
  0x9e   : > { %v1054_v16 = vpop.eup %1053  ;;  %653 = vst [vmem:[%s1365_s18 + $0x178] sm:$0xff] %v1052_v15  ;;  %1079 = vpow2.f32 %v408_v10 }
  0x9f   : > { %v1056_v17 = vpop.eup %1055  ;;  %v462_v18 = vadd.f32 1.0, %v1054_v16  ;;  %1081 = vpow2.f32 %v410_v12 }
  0xa0   : > { %v1058_v19 = vpop.eup %1057  ;;  %v463_v20 = vadd.f32 1.0, %v1056_v17  ;;  %1083 = vpow2.f32 %v412_v14 }
  0xa1   : > { %v1060_v21 = vpop.eup %1059  ;;  %1085 = vrcp.f32 %v462_v18  ;;  %v464_v22 = vadd.f32 1.0, %v1058_v19 }
  0xa2   : > { %v1062_v23 = vpop.eup %1061  ;;  %1087 = vrcp.f32 %v463_v20  ;;  %v465_v24 = vadd.f32 1.0, %v1060_v21 }
  0xa3   : > { %v1064_v25 = vpop.eup %1063  ;;  %1089 = vrcp.f32 %v464_v22  ;;  %v466_v26 = vadd.f32 1.0, %v1062_v23 }
  0xa4   : > { %v1066_v27 = vpop.eup %1065  ;;  %1091 = vrcp.f32 %v465_v24  ;;  %v467_v28 = vadd.f32 1.0, %v1064_v25 }
  0xa5   : > { %v1068_v29 = vpop.eup %1067  ;;  %1093 = vrcp.f32 %v466_v26  ;;  %v468_v30 = vadd.f32 1.0, %v1066_v27 }
  0xa6   : > { %v1070_v31 = vpop.eup %1069  ;;  %1095 = vrcp.f32 %v467_v28  ;;  %v469_v32 = vadd.f32 1.0, %v1068_v29 }
  0xa7   : > { %v1072_v33 = vpop.eup %1071  ;;  %1097 = vrcp.f32 %v468_v30  ;;  %v470_v34 = vadd.f32 1.0, %v1070_v31 }
  0xa8   : > { %v1074_v35 = vpop.eup %1073  ;;  %1099 = vrcp.f32 %v469_v32  ;;  %v471_v36 = vadd.f32 1.0, %v1072_v33 }
  0xa9   : > { %v1076_v37 = vpop.eup %1075  ;;  %1101 = vrcp.f32 %v470_v34  ;;  %v472_v38 = vadd.f32 1.0, %v1074_v35 }
  0xaa   : > { %v1078_v39 = vpop.eup %1077  ;;  %1103 = vrcp.f32 %v471_v36  ;;  %v473_v40 = vadd.f32 1.0, %v1076_v37 }
  0xab   : > { %v1080_v41 = vpop.eup %1079  ;;  %1105 = vrcp.f32 %v472_v38  ;;  %v474_v42 = vadd.f32 1.0, %v1078_v39 }
  0xac   : > { %v1082_v43 = vpop.eup %1081  ;;  %1107 = vrcp.f32 %v473_v40  ;;  %v475_v44 = vadd.f32 1.0, %v1080_v41 }
  0xad   : > { %v1084_v45 = vpop.eup %1083  ;;  %1109 = vrcp.f32 %v474_v42  ;;  %v476_v46 = vadd.f32 1.0, %v1082_v43 }
  0xae   : > { %v1086_v47 = vpop.eup %1085  ;;  %1111 = vrcp.f32 %v475_v44  ;;  %v477_v48 = vadd.f32 1.0, %v1084_v45 }
  0xaf   : > { %v1088_v49 = vpop.eup %1087  ;;  %654 = vst [vmem:[%s1365_s18 + $0x180] sm:$0xff] %v1086_v47  ;;  %1113 = vrcp.f32 %v476_v46 }
  0xb0   : > { %v1090_v50 = vpop.eup %1089  ;;  %655 = vst [vmem:[%s1365_s18 + $0x188] sm:$0xff] %v1088_v49  ;;  %1115 = vrcp.f32 %v477_v48 }
  0xb1   : > { %v1092_v51 = vpop.eup %1091  ;;  %656 = vst [vmem:[%s1365_s18 + $0x190] sm:$0xff] %v1090_v50 }
  0xb2   : > { %v1094_v52 = vpop.eup %1093  ;;  %657 = vst [vmem:[%s1365_s18 + $0x198] sm:$0xff] %v1092_v51 }
  0xb3   : > { %v1096_v53 = vpop.eup %1095  ;;  %658 = vst [vmem:[%s1365_s18 + $0x1a0] sm:$0xff] %v1094_v52 }
  0xb4   : > { %v1098_v54 = vpop.eup %1097  ;;  %659 = vst [vmem:[%s1365_s18 + $0x1a8] sm:$0xff] %v1096_v53 }
  0xb5   : > { %v1100_v55 = vpop.eup %1099  ;;  %660 = vst [vmem:[%s1365_s18 + $0x1b0] sm:$0xff] %v1098_v54 }
  0xb6   : > { %v1102_v56 = vpop.eup %1101  ;;  %661 = vst [vmem:[%s1365_s18 + $0x1b8] sm:$0xff] %v1100_v55 }
  0xb7   : > { %v1104_v57 = vpop.eup %1103  ;;  %662 = vst [vmem:[%s1365_s18 + $0x1c0] sm:$0xff] %v1102_v56 }
  0xb8   : > { %v1106_v58 = vpop.eup %1105  ;;  %663 = vst [vmem:[%s1365_s18 + $0x1c8] sm:$0xff] %v1104_v57 }
  0xb9   : > { %v1108_v59 = vpop.eup %1107  ;;  %664 = vst [vmem:[%s1365_s18 + $0x1d0] sm:$0xff] %v1106_v58 }
  0xba   : > { %v1110_v60 = vpop.eup %1109  ;;  %665 = vst [vmem:[%s1365_s18 + $0x1d8] sm:$0xff] %v1108_v59 }
  0xbb   : > { %v1112_v61 = vpop.eup %1111  ;;  %666 = vst [vmem:[%s1365_s18 + $0x1e0] sm:$0xff] %v1110_v60 }
  0xbc   : > { %v1114_v62 = vpop.eup %1113  ;;  %667 = vst [vmem:[%s1365_s18 + $0x1e8] sm:$0xff] %v1112_v61 }
  0xbd   : > { %v1116_v63 = vpop.eup %1115  ;;  %668 = vst [vmem:[%s1365_s18 + $0x1f0] sm:$0xff] %v1114_v62 }
  0xbe   : > { %669 = vst [vmem:[%s1365_s18 + $0x1f8] sm:$0xff] %v1116_v63 }
  0xbf   : > { %1158 = shalt.err (!%p1155_p6)
}
  0xc0   : > { %s1159_s4 = scalar_lea.hbm %s1472_s28, 8192  ;;  %s1163_s13 = scalar_lea.hbm %s1525_s1, 32768 }
  0xc1   : > { %p1160_p7 = scmp.ne.s32.totalorder %s1472_s28, %s1159_s4  ;;  %p1164_p12 = scmp.lt.s32.totalorder %s1472_s28, %s1525_s1 }
  0xc2   : > { %p1165_p1 = scmp.lt.s32.totalorder %s1163_s13, %s1159_s4 }
  0xc3   : > { %p1161_p10 = pnand %p1160_p7, %p1294_p9 }
  0xc4   : > { %p1166_p8 = por %p1165_p1, %p1164_p12 }
  0xc5   : > { %p1162_p4 = pneg %p1161_p10 }
  0xc7   : > { %p1167_p13 = pnand %p1166_p8, %p1162_p4 }
  0xc9   : > { %1170 = shalt.err (!%p1167_p13)
}
  0xca   : > { %s1231_s22 = smov 2048   ;;  %s1232_s23 = smov 128  }
  0xcb   : > { %797 = dma.vmem_to_hbm [thread:$0]  (%p1294_p9), %s1474_s25, 8192, %s1472_s28, %s671_s9, %s1231_s22, %s1231_s22, %s1232_s23  }
  0xcc PF: > { %p808_p0 = scmp.ge.s32.totalorder %s1225_s11, 2  ;;  %s702_s18 = sand.u32 1, %s1205_s6  }
  0xcd   : > { %s703_s24 = scalar_lea.sflag [#allocation4], %s702_s18 }
  0xce   : > { %p804_p2 = pnand %p808_p0, %p1301_p11 }
  0xd0   : > { %p805_p3 = pneg %p804_p2 }
  0xd2   : > { %1200 = dma.done.wait (%p805_p3), %s703_s24, 8192  }
  0xd3   : > { %1202 = vsyncadd (%p805_p3), %s703_s24, 4294959104  ;;  %s17_s11 = sadd.s32 1, %s1225_s11   ;;  %s1531_s6 = smov %s1209_s7 }
  0xd4   : > { %p14_p5 = scmp.ge.s32.totalorder %s17_s11, 6   ;;  %s1532_s7 = smov %s1213_s8 }
  0xd5   : > { %s1533_s8 = smov %s1299_s20  ;;  %s1534_s9 = smov %s1221_s10 }
  0xd6   : > { %s1535_s10 = smov %s1537_s14  ;;  %16 = sbr.rel (!%p14_p5) target bundleno = 6 (0x6), region = 69 }
  0xdb   :  { %708 = vsyncpa [#allocation3], 1 }
  0xdc   :  { %710 = vsyncpa [#allocation3 + $0x1], 1 }
  0xdd   :  { %711 = vsyncpa [#allocation4], 1 }
  0xde   :  { %713 = vsyncpa [#allocation4 + $0x1], 1 }

</bundles_post_ra>
